<compile_context>
chip_gen: v7x
topology: tpu7x:2x2x1
jax: 0.10.0
libtpu: 0.0.40
codegen_flags: <defaults>
</compile_context>

<pallas_src>
import functools

import jax
import jax.numpy as jnp
from jax.experimental import pallas as pl
from jax.experimental.pallas import tpu as pltpu


def _avg_pool_kernel(h_ref, m_ref, o_ref, num_acc, den_acc, *, seq_len, block_s):
    """One (block_b, block_s, block_h) tile of the masked-mean reduction.

    h_ref:   (block_b, block_s, block_h)  hidden-state tile
    m_ref:   (block_b, block_s)           mask tile (lane-dense)
    o_ref:   (block_b, block_h)           output rows (written at last S step)
    num_acc: (block_b, block_h) f32       running masked sum
    den_acc: (block_b, 1)       f32       running mask count
    """
    k = pl.program_id(2)

    @pl.when(k == 0)
    def _init():
        num_acc[...] = jnp.zeros_like(num_acc)
        den_acc[...] = jnp.zeros_like(den_acc)

    h = h_ref[...]                                     # (bB, tS, bH)
    m = m_ref[...]                                     # (bB, tS)

    if seq_len % block_s != 0:
        # Ragged S tail: zero BOTH the mask and h where the global sequence
        # index runs past the true end (the tail of the boundary block holds
        # stale VMEM data which could be NaN/Inf).
        s_idx = k * block_s + jax.lax.broadcasted_iota(jnp.int32, m.shape, 1)
        valid = s_idx < seq_len
        m = jnp.where(valid, m, jnp.zeros_like(m))
        h = jnp.where(valid[:, :, None], h, jnp.zeros_like(h))

    # Masked partial sum over this sequence tile as a batched MXU contraction
    # (bB,1,tS) x (bB,tS,bH) -> (bB,1,bH), f32 accumulation.  HIGHEST precision
    # keeps f32 inputs f32-accurate (no single-pass bf16 truncation).
    psum = jnp.einsum(
        "bqs,bsh->bqh", m[:, None, :], h,
        preferred_element_type=jnp.float32,
        precision=jax.lax.Precision.HIGHEST,
    )
    num_acc[...] += psum[:, 0, :]
    den_acc[...] += jnp.sum(m.astype(jnp.float32), axis=1, keepdims=True)

    @pl.when(k == pl.num_programs(2) - 1)
    def _finalize():
        den = den_acc[...]
        inv = pl.reciprocal(den, approx=True)          # EUP slot (otherwise idle)
        inv = inv * (2.0 - den * inv)                  # one Newton step -> ~f32 exact
        # NOTE: an all-zero mask row yields NaN, matching PyTorch's 0/0.
        o_ref[...] = (num_acc[...] * inv).astype(o_ref.dtype)


def _vmem_limit_bytes():
    # Scoped-VMEM budget: ~half of physical on v5e/v6e (128 MiB -> 64 MiB),
    # ~3/4 on v7x (64 MiB -> 48 MiB, leaving headroom for compiler scratch).
    try:
        cap = pltpu.get_tpu_info().vmem_capacity_bytes
    except Exception:
        cap = 128 * 1024 * 1024
    if cap >= 128 * 1024 * 1024:
        return 64 * 1024 * 1024
    return max(int(cap * 3 // 4), 32 * 1024 * 1024)


def _round_up(x, m):
    return ((x + m - 1) // m) * m


def average_pooling(h, target_position, *, block_b=None, block_s=None,
                    block_h=None, h_buffers=None):
    """h: (B, S, H), target_position: (B, S, 1) -> (B, H)."""
    B, S, H = h.shape
    assert target_position.shape == (B, S, 1)

    mask = target_position.reshape(B, S).astype(h.dtype)   # lane-dense mask

    itemsize = jnp.dtype(h.dtype).itemsize
    vmem_limit = _vmem_limit_bytes()
    # h-block budget: ~1/3 of the scoped limit (two pipeline buffers ~ 2/3;
    # mask/out/scratch blocks are comparatively tiny).
    per_buffer = vmem_limit // 3
    lane = 128

    # Batch rows per grid step: one packed sublane tile (8 f32 / 16 bf16 / 32 i8).
    if block_b is None:
        block_b = min(B, max(8, 32 // itemsize))

    # H tile: keep full H unless a (block_b, 512, H) block (lane-padded) would
    # blow the per-buffer budget; then tile H in multiples of 128 ("parallel"
    # axis -> v7x second-TensorCore work + restored double-buffering headroom).
    if block_h is None:
        if H <= lane or block_b * _round_up(H, lane) * 512 * itemsize <= per_buffer:
            block_h = H
        else:
            bh = per_buffer // (block_b * 512 * itemsize)
            block_h = min(_round_up(H, lane), max(lane, (bh // lane) * lane))

    # S tile: largest multiple of 128 whose LANE-PADDED h block fits the budget
    # (full S if it already fits).  No wrapper padding: ragged tails are masked
    # in-kernel.
    if block_s is None:
        fit = per_buffer // (block_b * _round_up(block_h, lane) * itemsize)
        block_s = S if fit >= S else max(lane, (fit // lane) * lane)

    grid = (pl.cdiv(B, block_b), pl.cdiv(H, block_h), pl.cdiv(S, block_s))

    h_spec_kwargs = {}
    if h_buffers is not None:
        # Optional deeper pipelining on the streaming h input (sweepable).
        h_spec_kwargs["pipeline_mode"] = pl.Buffered(h_buffers)

    kernel = functools.partial(_avg_pool_kernel, seq_len=S, block_s=block_s)

    out = pl.pallas_call(
        kernel,
        out_shape=jax.ShapeDtypeStruct((B, H), h.dtype),
        grid_spec=pltpu.PrefetchScalarGridSpec(
            num_scalar_prefetch=0,
            grid=grid,
            in_specs=[
                pl.BlockSpec((block_b, block_s, block_h),
                             lambda b, j, k: (b, k, j), **h_spec_kwargs),
                pl.BlockSpec((block_b, block_s), lambda b, j, k: (b, k)),
            ],
            out_specs=pl.BlockSpec((block_b, block_h), lambda b, j, k: (b, j)),
            scratch_shapes=[
                pltpu.VMEM((block_b, block_h), jnp.float32),   # num accumulator
                pltpu.VMEM((block_b, 1), jnp.float32),         # den accumulator
            ],
        ),
        compiler_params=pltpu.CompilerParams(
            dimension_semantics=("parallel", "parallel", "arbitrary"),
            vmem_limit_bytes=vmem_limit,
        ),
    )(h, mask)

    return out


def _reference(h, target_position):
    return jnp.sum(h * target_position, axis=1) / jnp.sum(target_position, axis=1)


if __name__ == "__main__":
    key = jax.random.PRNGKey(0)
    k1, k2, k3, k4, k5, k6 = jax.random.split(key, 6)

    # --- test 1: small shapes consistent with the module; single block -------
    B, S, H = 2, 8, 32
    h = jax.random.normal(k1, (B, S, H), dtype=jnp.float32)
    tp = (jax.random.uniform(k2, (B, S, 1)) > 0.3).astype(jnp.float32)
    tp = tp.at[:, 0, :].set(1.0)   # keep denominators nonzero

    out = average_pooling(h, tp)
    jax.block_until_ready(out)
    ref = _reference(h, tp)
    assert out.shape == (B, H)
    assert jnp.allclose(out, ref, atol=1e-5, rtol=1e-5)

    # --- test 2: ragged B (10 vs block 8) + ragged S tail (200 = 128 + 72) ---
    B2, S2, H2 = 10, 200, 64
    h2 = jax.random.normal(k3, (B2, S2, H2), dtype=jnp.float32)
    tp2 = (jax.random.uniform(k4, (B2, S2, 1)) > 0.5).astype(jnp.float32)
    tp2 = tp2.at[:, 0, :].set(1.0)

    out2 = average_pooling(h2, tp2, block_s=128)
    jax.block_until_ready(out2)
    ref2 = _reference(h2, tp2)
    assert out2.shape == (B2, H2)
    assert jnp.allclose(out2, ref2, atol=1e-4, rtol=1e-4)

    # --- test 3: H-tiled grid (2 H blocks) + ragged S tail (160 = 128 + 32) --
    B3, S3, H3 = 4, 160, 256
    h3 = jax.random.normal(k5, (B3, S3, H3), dtype=jnp.float32)
    tp3 = (jax.random.uniform(k6, (B3, S3, 1)) > 0.4).astype(jnp.float32)
    tp3 = tp3.at[:, 0, :].set(1.0)

    out3 = average_pooling(h3, tp3, block_s=128, block_h=128)
    jax.block_until_ready(out3)
    ref3 = _reference(h3, tp3)
    assert out3.shape == (B3, H3)
    assert jnp.allclose(out3, ref3, atol=1e-4, rtol=1e-4)

    print("KERNEL_OK")
</pallas_src>

<mosaic_0001>
module attributes {stable_mosaic.version = 11 : i64} {
  func.func @_avg_pool_kernel(%arg0: i32, %arg1: i32, %arg2: i32, %arg3: memref<2x8x32xf32, #tpu.memory_space<vmem>>, %arg4: memref<2x8xf32, #tpu.memory_space<vmem>>, %arg5: memref<2x32xf32, #tpu.memory_space<vmem>>, %arg6: memref<2x32xf32, #tpu.memory_space<vmem>>, %arg7: memref<2x1xf32, #tpu.memory_space<vmem>>) attributes {dimension_semantics = [#tpu.dimension_semantics<parallel>, #tpu.dimension_semantics<parallel>, #tpu.dimension_semantics<arbitrary>], iteration_bounds = array<i64: 1, 1, 1>, scalar_prefetch = 0 : i64, scratch_operands = 2 : i64, tpu.core_type = #tpu.core_type<tc>, window_params = [{transform_indices = @transform_0, window_bounds = array<i64: 2, 8, 32>}, {transform_indices = @transform_1, window_bounds = array<i64: 2, 8>}, {transform_indices = @transform_2, window_bounds = array<i64: 2, 32>}]} {
    %c0_i32 = arith.constant 0 : i32
    %0 = arith.cmpi eq, %arg2, %c0_i32 : i32
    %1 = arith.extui %0 : i1 to i32
    %c0_i32_0 = arith.constant 0 : i32
    %2 = arith.cmpi ne, %1, %c0_i32_0 : i32
    scf.if %2 {
      %cst_16 = arith.constant 0.000000e+00 : f32
      %19 = vector.broadcast %cst_16 : f32 to vector<2x32xf32>
      %c0_17 = arith.constant 0 : index
      %c0_18 = arith.constant 0 : index
      %20 = vector.load %arg6[%c0_17, %c0_18] : memref<2x32xf32, #tpu.memory_space<vmem>>, vector<2x32xf32>
      tpu.vector_store %arg6[%c0_17, %c0_18], %19 {strides = array<i32>} : memref<2x32xf32, #tpu.memory_space<vmem>>, vector<2x32xf32>,
      %cst_19 = arith.constant 0.000000e+00 : f32
      %21 = vector.broadcast %cst_19 : f32 to vector<2x1xf32>
      %c0_20 = arith.constant 0 : index
      %c0_21 = arith.constant 0 : index
      %22 = vector.load %arg7[%c0_20, %c0_21] : memref<2x1xf32, #tpu.memory_space<vmem>>, vector<2x1xf32>
      tpu.vector_store %arg7[%c0_20, %c0_21], %21 {strides = array<i32>} : memref<2x1xf32, #tpu.memory_space<vmem>>, vector<2x1xf32>,
    } else {
    }
    %c0 = arith.constant 0 : index
    %c0_1 = arith.constant 0 : index
    %c0_2 = arith.constant 0 : index
    %3 = vector.load %arg3[%c0, %c0_1, %c0_2] : memref<2x8x32xf32, #tpu.memory_space<vmem>>, vector<2x8x32xf32>
    %c0_3 = arith.constant 0 : index
    %c0_4 = arith.constant 0 : index
    %4 = vector.load %arg4[%c0_3, %c0_4] : memref<2x8xf32, #tpu.memory_space<vmem>>, vector<2x8xf32>
    %5 = vector.shape_cast %4 : vector<2x8xf32> to vector<2x1x8xf32>
    "tpu.trace_start"() <{level = 10 : i32, message = "bqs,bsh->bqh"}> : () -> ()
    %cst = arith.constant dense<0.000000e+00> : vector<2x1x32xf32>
    %6 = tpu.matmul %5, %3, %cst {dimension_numbers = #tpu.dot_dimension_numbers<[2], [1], [1], [2], [0, 0, 0, 1, 1, 2], [0], [0]>, precision = #tpu.contract_precision<fp32>} : vector<2x1x8xf32>, vector<2x8x32xf32>, vector<2x1x32xf32> -> vector<2x1x32xf32>
    "tpu.trace_stop"() : () -> ()
    %c0_5 = arith.constant 0 : index
    %c0_6 = arith.constant 0 : index
    %7 = vector.load %arg6[%c0_5, %c0_6] : memref<2x32xf32, #tpu.memory_space<vmem>>, vector<2x32xf32>
    %8 = vector.shape_cast %6 : vector<2x1x32xf32> to vector<2x32xf32>
    %9 = arith.addf %7, %8 : vector<2x32xf32>
    %c0_7 = arith.constant 0 : index
    %c0_8 = arith.constant 0 : index
    %10 = vector.load %arg6[%c0_7, %c0_8] : memref<2x32xf32, #tpu.memory_space<vmem>>, vector<2x32xf32>
    tpu.vector_store %arg6[%c0_7, %c0_8], %9 {strides = array<i32>} : memref<2x32xf32, #tpu.memory_space<vmem>>, vector<2x32xf32>,
    %c0_9 = arith.constant 0 : index
    %c0_10 = arith.constant 0 : index
    %11 = vector.load %arg7[%c0_9, %c0_10] : memref<2x1xf32, #tpu.memory_space<vmem>>, vector<2x1xf32>
    %cst_11 = arith.constant dense<0.000000e+00> : vector<2xf32>
    %12 = vector.multi_reduction <add>, %4, %cst_11 [1] : vector<2x8xf32> to vector<2xf32>
    %13 = vector.shape_cast %12 : vector<2xf32> to vector<2x1xf32>
    %14 = arith.addf %11, %13 : vector<2x1xf32>
    %c0_12 = arith.constant 0 : index
    %c0_13 = arith.constant 0 : index
    %15 = vector.load %arg7[%c0_12, %c0_13] : memref<2x1xf32, #tpu.memory_space<vmem>>, vector<2x1xf32>
    tpu.vector_store %arg7[%c0_12, %c0_13], %14 {strides = array<i32>} : memref<2x1xf32, #tpu.memory_space<vmem>>, vector<2x1xf32>,
    %c0_i32_14 = arith.constant 0 : i32
    %16 = arith.cmpi eq, %arg2, %c0_i32_14 : i32
    %17 = arith.extui %16 : i1 to i32
    %c0_i32_15 = arith.constant 0 : i32
    %18 = arith.cmpi ne, %17, %c0_i32_15 : i32
    scf.if %18 {
      %c0_16 = arith.constant 0 : index
      %c0_17 = arith.constant 0 : index
      %19 = vector.load %arg7[%c0_16, %c0_17] : memref<2x1xf32, #tpu.memory_space<vmem>>, vector<2x1xf32>
      %20 = tpu.reciprocal %19 {approx = true} : vector<2x1xf32> -> vector<2x1xf32>
      %21 = arith.mulf %19, %20 : vector<2x1xf32>
      %cst_18 = arith.constant 2.000000e+00 : f32
      %22 = vector.broadcast %cst_18 : f32 to vector<2x1xf32>
      %23 = arith.subf %22, %21 : vector<2x1xf32>
      %24 = arith.mulf %20, %23 : vector<2x1xf32>
      %c0_19 = arith.constant 0 : index
      %c0_20 = arith.constant 0 : index
      %25 = vector.load %arg6[%c0_19, %c0_20] : memref<2x32xf32, #tpu.memory_space<vmem>>, vector<2x32xf32>
      %26 = vector.broadcast %24 : vector<2x1xf32> to vector<2x32xf32>
      %27 = arith.mulf %25, %26 : vector<2x32xf32>
      %c0_21 = arith.constant 0 : index
      %c0_22 = arith.constant 0 : index
      %28 = vector.load %arg5[%c0_21, %c0_22] : memref<2x32xf32, #tpu.memory_space<vmem>>, vector<2x32xf32>
      tpu.vector_store %arg5[%c0_21, %c0_22], %27 {strides = array<i32>} : memref<2x32xf32, #tpu.memory_space<vmem>>, vector<2x32xf32>,
    } else {
    }
    return
  }
  func.func @transform_0(%arg0: i32, %arg1: i32, %arg2: i32) -> (i32, i32, i32) {
    %c0_i32 = arith.constant 0 : i32
    return %arg0, %arg2, %arg1 : i32, i32, i32
  }
  func.func @transform_1(%arg0: i32, %arg1: i32, %arg2: i32) -> (i32, i32) {
    %c0_i32 = arith.constant 0 : i32
    return %arg0, %arg2 : i32, i32
  }
  func.func @transform_2(%arg0: i32, %arg1: i32, %arg2: i32) -> (i32, i32) {
    %c0_i32 = arith.constant 0 : i32
    return %arg0, %arg1 : i32, i32
  }
}

</mosaic_0001>

<bundles_post_ra>
// kernel: tpu_custom_call.1
= control target key start
LH: loop header
LB: loop body
LE: loop exit
PB: predicated region body
PF: predicated region fallthrough
CT: control target
= control target key end

     0   :  { %7 = vsyncpa [#allocation5], 0  ;;  %s1322_s0 = inlined_call_operand.hbm [shape: f32[2,8,32], index: 0, kind: input, shape index: {}]   ;;  %s1323_s1 = inlined_call_operand.hbm [shape: f32[2,8], index: 1, kind: input, shape index: {}]   ;;  %s1324_s2 = inlined_call_operand.hbm [shape: f32[2,32], index: 2, kind: output, shape index: {}]  }
   0x1   :  { %8 = vsyncpa [#allocation8], 0 }
   0x2   :  { %9 = vsyncpa [#allocation6], 0  ;;  %s1207_s9 = smov [#allocation4]   ;;  %s1135_s13 = scalar_lea.hbm %s1322_s0, 256 }
   0x3   :  { %s15_s10 = sshll.u32 %s1207_s9, 4  ;;  %p1136_p0 = scmp.ne.s32.totalorder %s1322_s0, %s1135_s13  ;;  %s16_s10 = int_to_ptr.vmem [resolvable:$true] %s15_s10 }
   0x4   :  { %p1139_p1 = scmp.lt.u32.totalorder %s1135_s13, %s1322_s0 }
   0x6   :  { %p1141_p2 = pnand %p1139_p1, %p1136_p0 }
   0x8   :  { %1144 = shalt.err (!%p1141_p2)
}
   0x9   :  { %s1145_s18 = scalar_lea.vmem %s16_s10, 256  ;;  %p1150_p4 = scmp.lt.s32.totalorder %s16_s10, %s16_s10 }
   0xa   :  { %p1146_p3 = scmp.ne.s32.totalorder %s16_s10, %s1145_s18  ;;  %p1151_p5 = scmp.lt.s32.totalorder %s1145_s18, %s1145_s18 }
   0xc   :  { %p1152_p6 = por %p1151_p5, %p1150_p4 }
   0xe   :  { %p1153_p7 = pnand %p1152_p6, %p1146_p3 }
  0x10   :  { %1156 = shalt.err (!%p1153_p7)
}
  0x11   :  { %s1208_s19 = smov 128   ;;  %s1209_s20 = smov 8  }
  0x12   :  { %21 = dma.hbm_to_vmem [thread:$0]  %s1322_s0, 256, %s16_s10, [#allocation5], %s1208_s19, %s1208_s19, %s1209_s20  }
  0x13   :  { %s1210_s23 = smov [#allocation7]   ;;  %s1157_s27 = scalar_lea.hbm %s1323_s1, 32 }
  0x14   :  { %s28_s24 = sshll.u32 %s1210_s23, 4  ;;  %p1158_p8 = scmp.ne.s32.totalorder %s1323_s1, %s1157_s27  ;;  %s29_s24 = int_to_ptr.vmem [resolvable:$true] %s28_s24 }
  0x15   :  { %p1161_p9 = scmp.lt.u32.totalorder %s1157_s27, %s1323_s1 }
  0x17   :  { %p1163_p10 = pnand %p1161_p9, %p1158_p8 }
  0x19   :  { %1166 = shalt.err (!%p1163_p10)
}
  0x1a   :  { %s1167_s4 = scalar_lea.vmem %s29_s24, 32  ;;  %p1172_p12 = scmp.lt.s32.totalorder %s29_s24, %s29_s24 }
  0x1b   :  { %p1168_p11 = scmp.ne.s32.totalorder %s29_s24, %s1167_s4  ;;  %p1173_p13 = scmp.lt.s32.totalorder %s1167_s4, %s1167_s4 }
  0x1d   :  { %p1174_p0 = por %p1173_p13, %p1172_p12 }
  0x1f   :  { %p1175_p1 = pnand %p1174_p0, %p1168_p11 }
  0x21   :  { %1178 = shalt.err (!%p1175_p1)
}
  0x22   :  { %31 = dma.hbm_to_vmem [thread:$0]  %s1323_s1, 32, %s29_s24, [#allocation8]  }
  0x23   :  { %1201 = dma.done.wait [#allocation5], 256  }
  0x24   :  { %1202 = vsyncadd [#allocation5], 4294967040 }
  0x25   :  { %1203 = dma.done.wait [#allocation8], 32  }
  0x26   :  { %1204 = vsyncadd [#allocation8], 4294967264  ;;  %v53_v0 = vlaneseq  ;;  %v1211_v1 = vmov 1966171168   ;;  %vm44_vm0 = vcmask 1024   ;;  %v1212_v4 = vmov 0.0  }
  0x27   :  { %v51_v2 = vunpack.c.l.s4 %v1211_v1  ;;  %1043 = vmatprep.subr.mxu0 %v1212_v4  ;;  %vm1213_vm1 = vmmov 0   ;;  %45 = vst.msk [vmem:[#allocation3] sm:$0x3] %vm44_vm0, %v1212_v4  ;;  %1073 = vmatprep.subr.mxu1 %v1212_v4  ;;  %vm980_vm2 = vcmask 58368   ;;  %v48_v7 = vld [vmem:[#allocation7] sm:$0x3] }
  0x28   :  { %v54_v3 = vshrl.u32 %v53_v0, 7  ;;  %1045 = vmatprep.mubr.msk.f32.mxu0 %vm1213_vm1, %v1212_v4  ;;  %1075 = vmatprep.mubr.msk.f32.mxu1 %vm1213_vm1, %v1212_v4  ;;  %v46_v8 = vld [vmem:[#allocation4] sm:$0xff]  ;;  %v47_v9 = vld [vmem:[#allocation4 + $0x8] sm:$0xff]  ;;  %v981_v10 = vsel %vm980_vm2, %v48_v7, 0.0  ;;  %vm72_vm3 = vcmask 64512   ;;  %v1214_v37 = vmov 0  }
  0x29   :  { %v52_v5 = vunpack.c.0.s8 %v51_v2  ;;  %v1263_v12 = vand.u32 4294901760, %v46_v8  ;;  %v1265_v13 = vand.u32 4294901760, %v47_v9  ;;  %982 = vadd.xlane.f32.xlu0 %v981_v10  ;;  %vm42_vm4 = vcmask 254976   ;;  %s1215_s1 = smov [#allocation9]  }
  0x2a   :  { %1132 = vset.pattern.permute.xlu0 %v1214_v37  ;;  %43 = vst.msk [vmem:[#allocation2] sm:$0x3] %vm42_vm4, %v1212_v4  ;;  %vm973_vm5 = vcmask 1041409   ;;  %s1009_s6 = sshll.u32 %s1215_s1, 4  ;;  %s1010_s6 = int_to_ptr.vmem [resolvable:$true] %s1009_s6 }
  0x2b   :  { %v55_v6 = vsub.s32 %v52_v5, %v54_v3  ;;  %1044 = vmatpush3.msra.mxu0 %v1263_v12  ;;  %v153_v16 = vsub.f32 %v46_v8, %v1263_v12  ;;  %1074 = vmatpush3.msra.mxu1 %v1265_v13  ;;  %v601_v17 = vsub.f32 %v47_v9, %v1265_v13  ;;  %s1179_s7 = scalar_lea.vmem %s1010_s6, 32  ;;  %p1184_p3 = scmp.lt.s32.totalorder %s1010_s6, %s1010_s6 }
  0x2c   :  { %1048 = vmatprep.subr.mxu0 %v1212_v4  ;;  %1078 = vmatprep.subr.mxu1 %v1212_v4  ;;  %p1180_p2 = scmp.ne.s32.totalorder %s1010_s6, %s1179_s7  ;;  %p1185_p4 = scmp.lt.s32.totalorder %s1179_s7, %s1179_s7 }
  0x2d   :  { %v56_v11 = vrot.slane %v48_v7, %v55_v6  ;;  %v154_v20 = vand.u32 4294901760, %v153_v16  ;;  %v602_v23 = vand.u32 4294901760, %v601_v17 }
  0x2e   :  { %v979_v38 = vld [vmem:[#allocation3] sm:$0x3]  ;;  %p1186_p5 = por %p1185_p4, %p1184_p3 }
  0x2f   :  { %v57_v14 = vcombine.high %v56_v11, %v56_v11  ;;  %v64_v15 = vrot.slane %v56_v11, %v55_v6  ;;  %v155_v26 = vsub.f32 %v153_v16, %v154_v20  ;;  %v603_v29 = vsub.f32 %v601_v17, %v602_v23 }
  0x30   :  { %p1187_p6 = pnand %p1186_p5, %p1180_p2 }
  0x31   :  { %v71_v18 = vrot.slane %v57_v14, %v55_v6  ;;  %v73_v19 = vsel %vm72_vm3, %v64_v15, 0  ;;  %v156_v32 = vand.u32 4294901760, %v155_v26  ;;  %v604_v35 = vand.u32 4294901760, %v603_v29  ;;  %v969_v51 = vld [vmem:[#allocation2] sm:$0x3] }
  0x32   :  { %v141_v21 = vand.u32 4294901760, %v73_v19 }
  0x33   :  { %v521_v22 = vsel %vm72_vm3, %v71_v18, 0 }
  0x34   :  { %v142_v24 = vsub.f32 %v73_v19, %v141_v21  ;;  %v589_v25 = vand.u32 4294901760, %v521_v22 }
  0x36   :  { %v590_v27 = vsub.f32 %v521_v22, %v589_v25  ;;  %v143_v28 = vand.u32 4294901760, %v142_v24 }
  0x38   :  { %v144_v30 = vsub.f32 %v142_v24, %v143_v28  ;;  %v591_v31 = vand.u32 4294901760, %v590_v27 }
  0x3a   :  { %v145_v33 = vand.u32 4294901760, %v144_v30  ;;  %v592_v34 = vsub.f32 %v590_v27, %v591_v31 }
  0x3c   :  { %1046 = vmatmul.mubr.f32.vlgmr.msra.gmra.mrb[0].mxu0 %v145_v33  ;;  %v593_v36 = vand.u32 4294901760, %v592_v34 }
  0x3d   :  { %1049 = vmatpush3.msra.mxu0 %v156_v32  ;;  %1050 = vmatprep.mubr.msk.f32.mxu0 %vm1213_vm1, %v1212_v4 }
  0x3e   :  { %1076 = vmatmul.mubr.f32.vlgmr.msra.gmra.mrb[0].mxu1 %v593_v36  ;;  %1053 = vmatprep.subr.mxu0 %v1212_v4 }
  0x3f   :  { %1079 = vmatpush3.msra.mxu1 %v604_v35  ;;  %1080 = vmatprep.mubr.msk.f32.mxu1 %vm1213_vm1, %v1212_v4 }
  0x40   :  { %1083 = vmatprep.subr.mxu1 %v1212_v4 }
  0x44   :  { %1051 = vmatmul.mubr.f32.vlgmr.msra.gmra.mrb[0].mxu0 %v141_v21 }
  0x45   :  { %1054 = vmatpush3.msra.mxu0 %v153_v16  ;;  %1055 = vmatprep.mubr.msk.f32.mxu0 %vm1213_vm1, %v1212_v4 }
  0x46   :  { %1081 = vmatmul.mubr.f32.vlgmr.msra.gmra.mrb[0].mxu1 %v589_v25  ;;  %1058 = vmatprep.subr.mxu0 %v1212_v4 }
  0x47   :  { %1084 = vmatpush3.msra.mxu1 %v601_v17  ;;  %1085 = vmatprep.mubr.msk.f32.mxu1 %vm1213_vm1, %v1212_v4 }
  0x48   :  { %1088 = vmatprep.subr.mxu1 %v1212_v4 }
  0x4c   :  { %1056 = vmatmul.mubr.f32.vlgmr.msra.gmra.mrb[0].mxu0 %v142_v24 }
  0x4d   :  { %1059 = vmatpush3.msra.mxu0 %v1263_v12  ;;  %1060 = vmatprep.mubr.msk.f32.mxu0 %vm1213_vm1, %v1212_v4 }
  0x4e   :  { %1086 = vmatmul.mubr.f32.vlgmr.msra.gmra.mrb[0].mxu1 %v590_v27  ;;  %1063 = vmatprep.subr.mxu0 %v1212_v4 }
  0x4f   :  { %1089 = vmatpush3.msra.mxu1 %v1265_v13  ;;  %1090 = vmatprep.mubr.msk.f32.mxu1 %vm1213_vm1, %v1212_v4 }
  0x50   :  { %1093 = vmatprep.subr.mxu1 %v1212_v4 }
  0x54   :  { %1061 = vmatmul.mubr.f32.vlgmr.msra.gmra.mrb[0].mxu0 %v143_v28 }
  0x55   :  { %1064 = vmatpush3.msra.mxu0 %v154_v20  ;;  %1065 = vmatprep.mubr.msk.f32.mxu0 %vm1213_vm1, %v1212_v4 }
  0x56   :  { %1091 = vmatmul.mubr.f32.vlgmr.msra.gmra.mrb[0].mxu1 %v591_v31  ;;  %1068 = vmatprep.subr.mxu0 %v1212_v4 }
  0x57   :  { %1094 = vmatpush3.msra.mxu1 %v602_v23  ;;  %1095 = vmatprep.mubr.msk.f32.mxu1 %vm1213_vm1, %v1212_v4 }
  0x58   :  { %1098 = vmatprep.subr.mxu1 %v1212_v4 }
  0x5c   :  { %1066 = vmatmul.mubr.f32.vlgmr.msra.gmra.mrb[0].mxu0 %v141_v21 }
  0x5d   :  { %1069 = vmatpush3.msra.mxu0 %v1263_v12  ;;  %1070 = vmatprep.mubr.msk.f32.mxu0 %vm1213_vm1, %v1212_v4 }
  0x5e   :  { %1096 = vmatmul.mubr.f32.vlgmr.msra.gmra.mrb[0].mxu1 %v589_v25 }
  0x5f   :  { %1099 = vmatpush3.msra.mxu1 %v1265_v13  ;;  %1100 = vmatprep.mubr.msk.f32.mxu1 %vm1213_vm1, %v1212_v4 }
  0x64   :  { %1071 = vmatmul.mubr.f32.vlgmr.msra.gmra.mrb[0].mxu0 %v141_v21 }
  0x66   :  { %1101 = vmatmul.mubr.f32.vlgmr.msra.gmra.mrb[0].mxu1 %v589_v25 }
  0xb6   :  { %v983_v39 = vpop.xlane.xlu0 %982 }
  0xb7   :  { %v984_v40 = vadd.f32 %v983_v39, %v979_v38 }
  0xb9   :  { %986 = vst.msk [vmem:[#allocation3] sm:$0x3] %vm44_vm0, %v984_v40 }
  0xc0   :  { %v990_v41 = vld [vmem:[#allocation3] sm:$0x3] }
  0xc1   :  { %1133 = vrcp.f32 %v990_v41 }
  0xcb   :  { %v1134_v42 = vpop.eup %1133 }
  0xcc   :  { %v992_v43 = vmul.f32 %v1134_v42, %v990_v41 }
  0xce   :  { %v993_v44 = vsub.f32 2.0, %v992_v43 }
  0xd0   :  { %v994_v45 = vmul.f32 %v1134_v42, %v993_v44 }
  0xd2   :  { %998 = vperm.xlu0 %1132, %v994_v45  }
 0x137   :  { %v517_v46 = vpop.f32.mrb[0].mxu0 }
 0x138   :  { %v1072_v47 = vpop.f32.mrb[1].mxu0 }
 0x139   :  { %v965_v48 = vpop.f32.mrb[0].mxu1 }
 0x13a   :  { %v972_v49 = vrot.slane %v965_v48, 7  ;;  %v1102_v50 = vpop.f32.mrb[1].mxu1 }
 0x13c   :  { %v974_v52 = vsel %vm973_vm5, %v972_v49, %v517_v46 }
 0x13d   :  { %v976_v53 = vadd.f32 %v974_v52, %v969_v51 }
 0x13f   :  { %978 = vst.msk [vmem:[#allocation2] sm:$0x3] %vm42_vm4, %v976_v53 }
 0x146   :  { %v995_v55 = vld [vmem:[#allocation2] sm:$0x3] }
 0x151   :  { %v999_v54 = vpop.permute.xlu0 %998 }
 0x152   :  { %v1001_v56 = vmul.f32 %v999_v54, %v995_v55 }
 0x154   :  { %1002 = vst.msk [vmem:[#allocation9] sm:$0x3] %vm42_vm4, %v1001_v56 }
 0x155   :  { %1190 = shalt.err (!%p1187_p6)
}
 0x156   :  { %s1191_s10 = scalar_lea.hbm %s1324_s2, 32 }
 0x157   :  { %p1192_p7 = scmp.ne.s32.totalorder %s1324_s2, %s1191_s10  ;;  %p1195_p8 = scmp.lt.u32.totalorder %s1191_s10, %s1324_s2 }
 0x159   :  { %p1197_p9 = pnand %p1195_p8, %p1192_p7 }
 0x15b   :  { %1200 = shalt.err (!%p1197_p9)
}
 0x15c   :  { %1012 = dma.vmem_to_hbm [thread:$0]  %s1010_s6, 32, %s1324_s2, [#allocation6]  }
 0x15d   :  { %1205 = dma.done.wait [#allocation6], 32  }
 0x15e   :  { %1206 = vsyncadd [#allocation6], 4294967264 }
 0x15f   :  { %1016 = vsyncpa [#allocation5], 1 }
 0x160   :  { %1017 = vsyncpa [#allocation8], 1 }
 0x161   :  { %1018 = vsyncpa [#allocation6], 1 }

</bundles_post_ra>
